<compile_context>
chip_gen: v7x
topology: tpu7x:2x2x1
jax: 0.10.0
libtpu: 0.0.40
codegen_flags: <defaults>
</compile_context>

<pallas_src>
import jax
import jax.numpy as jnp
from jax.experimental import pallas as pl
from jax.experimental.pallas import tpu as pltpu

# ----------------------- model sizes (small, synthetic) -----------------------
B, C, H, W  = 2, 4, 16, 16         # input  [2, 4, 16, 16]  (NCHW)
IN_FEAT     = C * H * W            # 1024
LATENT      = 32                   # encoder output width (logical)
HIDDEN      = 64                   # classifier hidden width (logical)
NUM_CLASSES = 10
LAT_PAD     = 128                  # lane-dense padded widths
HID_PAD     = 128
OUT_PAD     = 128


def _pick_tile(b):
    """Batch tile: 16-row minimum (bf16 sublane pack); split into >=2 tiles
    only when the batch is big enough for a second TensorCore to pay off."""
    b16 = ((b + 15) // 16) * 16
    if b16 <= 16:
        return 16
    half = ((b16 // 2 + 15) // 16) * 16
    return min(128, half)


# ------------------------------- Pallas kernel --------------------------------
def _enc_cls_kernel(x_ref, we_ref, w1_ref, w2_ref, bias_ref, o_ref):
    # bias_ref is one consolidated (8, OUT_PAD) f32 constant:
    #   row 0 = encoder bias, row 1 = hidden bias, row 2 = logit bias
    # (each zero-padded to the full 128-lane width).
    bias = bias_ref[...]
    be = bias[0:1, :]                # (1, LAT_PAD)  f32
    b1 = bias[1:2, :]                # (1, HID_PAD)  f32
    b2 = bias[2:3, :]                # (1, OUT_PAD)  f32

    # encoder: Linear + ReLU   (bf16 MXU operands, f32 accumulation, f32 epilogue)
    h = jnp.dot(x_ref[...], we_ref[...], preferred_element_type=jnp.float32)
    h = jnp.maximum(h + be, 0.0)
    # classifier layer 1: Linear + ReLU
    h = jnp.dot(h.astype(jnp.bfloat16), w1_ref[...],
                preferred_element_type=jnp.float32)
    h = jnp.maximum(h + b1, 0.0)
    # classifier layer 2: Linear (logits) -> lane-dense (TB, OUT_PAD) store
    y = jnp.dot(h.astype(jnp.bfloat16), w2_ref[...],
                preferred_element_type=jnp.float32)
    o_ref[...] = (y + b2).astype(o_ref.dtype)


def encoder_classifier_forward(x_nchw, params):
    """x_nchw: [B, C, H, W] float32 -> logits [B, NUM_CLASSES] float32."""
    we, be, w1, b1, w2, b2 = params
    b = x_nchw.shape[0]

    # glue: same as torch x.view(B, -1); cast matmul operand to bf16
    x_flat = x_nchw.reshape(b, -1).astype(jnp.bfloat16)

    # pad batch up to a multiple of the (small) tile
    tb = _pick_tile(b)
    n_tiles = pl.cdiv(b, tb)
    b_pad = n_tiles * tb
    if b_pad != b:
        x_flat = jnp.pad(x_flat, ((0, b_pad - b), (0, 0)))

    # bf16 weights, zero-padded to lane-dense 128-wide feature dims.
    # Padded rows/cols are zero, so the extra lanes carry exact zeros through
    # the ReLUs and contribute nothing to downstream matmuls (bit-exact w.r.t.
    # the unpadded computation).
    we_bf = jnp.pad(we, ((0, 0), (0, LAT_PAD - LATENT))).astype(jnp.bfloat16)
    w1_bf = jnp.pad(w1, ((0, LAT_PAD - LATENT),
                         (0, HID_PAD - HIDDEN))).astype(jnp.bfloat16)
    w2_bf = jnp.pad(w2, ((0, HID_PAD - HIDDEN),
                         (0, OUT_PAD - NUM_CLASSES))).astype(jnp.bfloat16)

    # consolidate the three tiny biases into one (8, OUT_PAD) f32 VMEM constant
    bias = jnp.zeros((8, OUT_PAD), jnp.float32)
    bias = bias.at[0, :LATENT].set(be.reshape(-1))
    bias = bias.at[1, :HIDDEN].set(b1.reshape(-1))
    bias = bias.at[2, :NUM_CLASSES].set(b2.reshape(-1))

    # honest scheduling hint for the actual (small) padded batch
    flops = 2 * b_pad * (IN_FEAT * LAT_PAD + LAT_PAD * HID_PAD + HID_PAD * OUT_PAD)
    bytes_accessed = (x_flat.size * 2 + we_bf.size * 2 + w1_bf.size * 2
                      + w2_bf.size * 2 + bias.size * 4 + b_pad * OUT_PAD * 4)

    out = pl.pallas_call(
        _enc_cls_kernel,
        out_shape=jax.ShapeDtypeStruct((b_pad, OUT_PAD), jnp.float32),
        grid_spec=pltpu.PrefetchScalarGridSpec(
            num_scalar_prefetch=0,
            grid=(n_tiles,),
            in_specs=[
                pl.BlockSpec((tb, IN_FEAT),       lambda i: (i, 0)),  # x tile
                pl.BlockSpec((IN_FEAT, LAT_PAD),  lambda i: (0, 0)),  # we (resident)
                pl.BlockSpec((LAT_PAD, HID_PAD),  lambda i: (0, 0)),  # w1 (resident)
                pl.BlockSpec((HID_PAD, OUT_PAD),  lambda i: (0, 0)),  # w2 (resident)
                pl.BlockSpec((8, OUT_PAD),        lambda i: (0, 0)),  # fused biases
            ],
            out_specs=pl.BlockSpec((tb, OUT_PAD), lambda i: (i, 0)),
        ),
        compiler_params=pltpu.CompilerParams(
            dimension_semantics=("parallel",)),
        cost_estimate=pl.CostEstimate(
            flops=flops, transcendentals=0, bytes_accessed=bytes_accessed),
    )(x_flat, we_bf, w1_bf, w2_bf, bias)

    # strip batch padding and the lane padding of the logits
    return out[:b, :NUM_CLASSES]


# --------------------------- deterministic weights ----------------------------
def init_params(key):
    k = jax.random.split(key, 6)
    scale_e = 1.0 / jnp.sqrt(IN_FEAT)
    scale_1 = 1.0 / jnp.sqrt(LATENT)
    scale_2 = 1.0 / jnp.sqrt(HIDDEN)
    we = jax.random.uniform(k[0], (IN_FEAT, LATENT), jnp.float32, -scale_e, scale_e)
    be = jax.random.uniform(k[1], (1, LATENT),       jnp.float32, -scale_e, scale_e)
    w1 = jax.random.uniform(k[2], (LATENT, HIDDEN),  jnp.float32, -scale_1, scale_1)
    b1 = jax.random.uniform(k[3], (1, HIDDEN),       jnp.float32, -scale_1, scale_1)
    w2 = jax.random.uniform(k[4], (HIDDEN, NUM_CLASSES), jnp.float32, -scale_2, scale_2)
    b2 = jax.random.uniform(k[5], (1, NUM_CLASSES),      jnp.float32, -scale_2, scale_2)
    return we, be, w1, b1, w2, b2


# pure-JAX f32 reference for a sanity check (kernel uses bf16 operands)
def _ref_forward(x_nchw, params):
    we, be, w1, b1, w2, b2 = params
    h = x_nchw.reshape(x_nchw.shape[0], -1)
    h = jnp.maximum(h @ we + be, 0.0)
    h = jnp.maximum(h @ w1 + b1, 0.0)
    return h @ w2 + b2


if __name__ == "__main__":
    key = jax.random.PRNGKey(0)
    k_x, k_p = jax.random.split(key)
    x = jax.random.normal(k_x, (B, C, H, W), jnp.float32)   # NCHW input
    params = init_params(k_p)

    y = encoder_classifier_forward(x, params)
    y = jax.block_until_ready(y)

    y_ref = _ref_forward(x, params)
    assert y.shape == (B, NUM_CLASSES)
    # bf16 matmul operands (K=1024 reduction) vs f32 reference -> relaxed tolerance
    assert jnp.allclose(y, y_ref, atol=2e-2, rtol=2e-2), "mismatch vs reference"
    print("KERNEL_OK")
</pallas_src>

<mosaic_0001>
module attributes {stable_mosaic.version = 11 : i64} {
  func.func @_enc_cls_kernel(%arg0: i32, %arg1: memref<16x1024xbf16, #tpu.memory_space<vmem>>, %arg2: memref<1024x128xbf16, #tpu.memory_space<vmem>>, %arg3: memref<128x128xbf16, #tpu.memory_space<vmem>>, %arg4: memref<128x128xbf16, #tpu.memory_space<vmem>>, %arg5: memref<8x128xf32, #tpu.memory_space<vmem>>, %arg6: memref<16x128xf32, #tpu.memory_space<vmem>>) attributes {dimension_semantics = [#tpu.dimension_semantics<parallel>], iteration_bounds = array<i64: 1>, scalar_prefetch = 0 : i64, scratch_operands = 0 : i64, tpu.core_type = #tpu.core_type<tc>, window_params = [{transform_indices = @transform_0, window_bounds = array<i64: 16, 1024>}, {pipeline_mode = #tpu.pipeline_mode<synchronous>, transform_indices = @transform_1, window_bounds = array<i64: 1024, 128>}, {pipeline_mode = #tpu.pipeline_mode<synchronous>, transform_indices = @transform_2, window_bounds = array<i64: 128, 128>}, {pipeline_mode = #tpu.pipeline_mode<synchronous>, transform_indices = @transform_3, window_bounds = array<i64: 128, 128>}, {pipeline_mode = #tpu.pipeline_mode<synchronous>, transform_indices = @transform_4, window_bounds = array<i64: 8, 128>}, {transform_indices = @transform_5, window_bounds = array<i64: 16, 128>}]} {
    %c0 = arith.constant 0 : index
    %c0_0 = arith.constant 0 : index
    %0 = vector.load %arg5[%c0, %c0_0] : memref<8x128xf32, #tpu.memory_space<vmem>>, vector<8x128xf32>
    %1 = vector.extract_strided_slice %0 {offsets = [0, 0], sizes = [1, 128], strides = [1, 1]} : vector<8x128xf32> to vector<1x128xf32>
    %2 = vector.extract_strided_slice %0 {offsets = [1, 0], sizes = [1, 128], strides = [1, 1]} : vector<8x128xf32> to vector<1x128xf32>
    %3 = vector.extract_strided_slice %0 {offsets = [2, 0], sizes = [1, 128], strides = [1, 1]} : vector<8x128xf32> to vector<1x128xf32>
    %c0_1 = arith.constant 0 : index
    %c0_2 = arith.constant 0 : index
    %4 = vector.load %arg1[%c0_1, %c0_2] : memref<16x1024xbf16, #tpu.memory_space<vmem>>, vector<16x1024xbf16>
    %c0_3 = arith.constant 0 : index
    %c0_4 = arith.constant 0 : index
    %5 = vector.load %arg2[%c0_3, %c0_4] : memref<1024x128xbf16, #tpu.memory_space<vmem>>, vector<1024x128xbf16>
    %cst = arith.constant dense<0.000000e+00> : vector<16x128xf32>
    %6 = tpu.matmul %4, %5, %cst {dimension_numbers = #tpu.dot_dimension_numbers<[1], [0], [0], [1], [0, 0, 1, 1], [], []>} : vector<16x1024xbf16>, vector<1024x128xbf16>, vector<16x128xf32> -> vector<16x128xf32>
    %7 = vector.broadcast %1 : vector<1x128xf32> to vector<16x128xf32>
    %8 = arith.addf %6, %7 : vector<16x128xf32>
    %cst_5 = arith.constant 0.000000e+00 : f32
    %9 = vector.broadcast %cst_5 : f32 to vector<16x128xf32>
    %10 = arith.maximumf %8, %9 : vector<16x128xf32>
    %11 = arith.truncf %10 : vector<16x128xf32> to vector<16x128xbf16>
    %c0_6 = arith.constant 0 : index
    %c0_7 = arith.constant 0 : index
    %12 = vector.load %arg3[%c0_6, %c0_7] : memref<128x128xbf16, #tpu.memory_space<vmem>>, vector<128x128xbf16>
    %cst_8 = arith.constant dense<0.000000e+00> : vector<16x128xf32>
    %13 = tpu.matmul %11, %12, %cst_8 {dimension_numbers = #tpu.dot_dimension_numbers<[1], [0], [0], [1], [0, 0, 1, 1], [], []>} : vector<16x128xbf16>, vector<128x128xbf16>, vector<16x128xf32> -> vector<16x128xf32>
    %14 = vector.broadcast %2 : vector<1x128xf32> to vector<16x128xf32>
    %15 = arith.addf %13, %14 : vector<16x128xf32>
    %cst_9 = arith.constant 0.000000e+00 : f32
    %16 = vector.broadcast %cst_9 : f32 to vector<16x128xf32>
    %17 = arith.maximumf %15, %16 : vector<16x128xf32>
    %18 = arith.truncf %17 : vector<16x128xf32> to vector<16x128xbf16>
    %c0_10 = arith.constant 0 : index
    %c0_11 = arith.constant 0 : index
    %19 = vector.load %arg4[%c0_10, %c0_11] : memref<128x128xbf16, #tpu.memory_space<vmem>>, vector<128x128xbf16>
    %cst_12 = arith.constant dense<0.000000e+00> : vector<16x128xf32>
    %20 = tpu.matmul %18, %19, %cst_12 {dimension_numbers = #tpu.dot_dimension_numbers<[1], [0], [0], [1], [0, 0, 1, 1], [], []>} : vector<16x128xbf16>, vector<128x128xbf16>, vector<16x128xf32> -> vector<16x128xf32>
    %21 = vector.broadcast %3 : vector<1x128xf32> to vector<16x128xf32>
    %22 = arith.addf %20, %21 : vector<16x128xf32>
    %c0_13 = arith.constant 0 : index
    %c0_14 = arith.constant 0 : index
    %23 = vector.load %arg6[%c0_13, %c0_14] : memref<16x128xf32, #tpu.memory_space<vmem>>, vector<16x128xf32>
    tpu.vector_store %arg6[%c0_13, %c0_14], %22 {strides = array<i32>} : memref<16x128xf32, #tpu.memory_space<vmem>>, vector<16x128xf32>,
    return
  }
  func.func @transform_0(%arg0: i32) -> (i32, i32) {
    %c0_i32 = arith.constant 0 : i32
    %c0_i32_0 = arith.constant 0 : i32
    return %arg0, %c0_i32 : i32, i32
  }
  func.func @transform_1(%arg0: i32) -> (i32, i32) {
    %c0_i32 = arith.constant 0 : i32
    %c0_i32_0 = arith.constant 0 : i32
    %c0_i32_1 = arith.constant 0 : i32
    return %c0_i32, %c0_i32_0 : i32, i32
  }
  func.func @transform_2(%arg0: i32) -> (i32, i32) {
    %c0_i32 = arith.constant 0 : i32
    %c0_i32_0 = arith.constant 0 : i32
    %c0_i32_1 = arith.constant 0 : i32
    return %c0_i32, %c0_i32_0 : i32, i32
  }
  func.func @transform_3(%arg0: i32) -> (i32, i32) {
    %c0_i32 = arith.constant 0 : i32
    %c0_i32_0 = arith.constant 0 : i32
    %c0_i32_1 = arith.constant 0 : i32
    return %c0_i32, %c0_i32_0 : i32, i32
  }
  func.func @transform_4(%arg0: i32) -> (i32, i32) {
    %c0_i32 = arith.constant 0 : i32
    %c0_i32_0 = arith.constant 0 : i32
    %c0_i32_1 = arith.constant 0 : i32
    return %c0_i32, %c0_i32_0 : i32, i32
  }
  func.func @transform_5(%arg0: i32) -> (i32, i32) {
    %c0_i32 = arith.constant 0 : i32
    %c0_i32_0 = arith.constant 0 : i32
    return %arg0, %c0_i32 : i32, i32
  }
}

</mosaic_0001>

<bundles_post_ra>
// kernel: tpu_custom_call.1
= control target key start
LH: loop header
LB: loop body
LE: loop exit
PB: predicated region body
PF: predicated region fallthrough
CT: control target
= control target key end

     0   :  { %10 = vsyncpa [#allocation3], 0  ;;  %s1636_s0 = inlined_call_operand.hbm [shape: bf16[16,1024], index: 0, kind: input, shape index: {}]   ;;  %s1637_s1 = inlined_call_operand.hbm [shape: bf16[1024,128], index: 1, kind: input, shape index: {}]   ;;  %s1638_s2 = inlined_call_operand.hbm [shape: bf16[128,128], index: 2, kind: input, shape index: {}]   ;;  %s1639_s3 = inlined_call_operand.hbm [shape: bf16[128,128], index: 3, kind: input, shape index: {}]   ;;  %s1640_s4 = inlined_call_operand.vmem [shape: f32[8,128], index: 4, kind: input, shape index: {}]   ;;  %s1641_s5 = inlined_call_operand.hbm [shape: f32[16,128], index: 5, kind: output, shape index: {}]  }
   0x1   :  { %11 = vsyncpa [#allocation6], 0 }
   0x2   :  { %12 = vsyncpa [#allocation9], 0 }
   0x3   :  { %13 = vsyncpa [#allocation4], 0  ;;  %s1496_s18 = smov [#allocation5]   ;;  %s1378_s22 = scalar_lea.hbm %s1637_s1, 8192 }
   0x4   :  { %s31_s19 = sshll.u32 %s1496_s18, 4  ;;  %p1379_p0 = scmp.ne.s32.totalorder %s1637_s1, %s1378_s22  ;;  %s32_s19 = int_to_ptr.vmem [resolvable:$true] %s31_s19 }
   0x5   :  { %p1382_p1 = scmp.lt.u32.totalorder %s1378_s22, %s1637_s1 }
   0x7   :  { %p1384_p2 = pnand %p1382_p1, %p1379_p0 }
   0x9   :  { %1387 = shalt.err (!%p1384_p2)
}
   0xa   :  { %s1388_s27 = scalar_lea.vmem %s32_s19, 8192  ;;  %p1393_p4 = scmp.lt.s32.totalorder %s32_s19, %s32_s19 }
   0xb   :  { %p1389_p3 = scmp.ne.s32.totalorder %s32_s19, %s1388_s27  ;;  %p1394_p5 = scmp.lt.s32.totalorder %s1388_s27, %s1388_s27 }
   0xd   :  { %p1395_p6 = por %p1394_p5, %p1393_p4 }
   0xf   :  { %p1396_p7 = pnand %p1395_p6, %p1389_p3 }
  0x11   :  { %1399 = shalt.err (!%p1396_p7)
}
  0x12   :  { %s1497_s28 = smov 64   ;;  %s1498_s29 = smov 4  }
  0x13   :  { %37 = dma.hbm_to_vmem [thread:$0]  %s1637_s1, 8192, %s32_s19, [#allocation6], %s1497_s28, %s1497_s28, %s1498_s29  }
  0x14   :  { %s1499_s7 = smov [#allocation2]   ;;  %s1400_s11 = scalar_lea.hbm %s1636_s0, 1024 }
  0x15   :  { %s19_s8 = sshll.u32 %s1499_s7, 4  ;;  %p1401_p8 = scmp.ne.s32.totalorder %s1636_s0, %s1400_s11  ;;  %s20_s8 = int_to_ptr.vmem [resolvable:$true] %s19_s8 }
  0x16   :  { %p1404_p9 = scmp.lt.u32.totalorder %s1400_s11, %s1636_s0 }
  0x18   :  { %p1406_p10 = pnand %p1404_p9, %p1401_p8 }
  0x1a   :  { %1409 = shalt.err (!%p1406_p10)
}
  0x1b   :  { %s1410_s16 = scalar_lea.vmem %s20_s8, 1024  ;;  %p1415_p12 = scmp.lt.s32.totalorder %s20_s8, %s20_s8 }
  0x1c   :  { %p1411_p11 = scmp.ne.s32.totalorder %s20_s8, %s1410_s16  ;;  %p1416_p13 = scmp.lt.s32.totalorder %s1410_s16, %s1410_s16 }
  0x1e   :  { %p1417_p0 = por %p1416_p13, %p1415_p12 }
  0x20   :  { %p1418_p1 = pnand %p1417_p0, %p1411_p11 }
  0x22   :  { %1421 = shalt.err (!%p1418_p1)
}
  0x23   :  { %s1500_s1 = smov 512   ;;  %s1501_s17 = smov 32  }
  0x24   :  { %25 = dma.hbm_to_vmem [thread:$0]  %s1636_s0, 1024, %s20_s8, [#allocation3], %s1500_s1, %s1500_s1, %s1501_s17  }
  0x25   :  { %s1502_s20 = smov [#allocation7]   ;;  %s1503_s22 = smov [#allocation8]  }
  0x26   :  { %s43_s21 = sshll.u32 %s1502_s20, 4  ;;  %s55_s23 = sshll.u32 %s1503_s22, 4  ;;  %s44_s21 = int_to_ptr.vmem [resolvable:$true] %s43_s21  ;;  %s1566_s23 = int_to_ptr.vmem [resolvable:$true] %s55_s23 }
  0x27   :  { %s1422_s26 = scalar_lea.hbm %s1638_s2, 1024 }
  0x28   :  { %p1423_p2 = scmp.ne.s32.totalorder %s1638_s2, %s1422_s26  ;;  %p1426_p3 = scmp.lt.u32.totalorder %s1422_s26, %s1638_s2 }
  0x2a   :  { %p1428_p4 = pnand %p1426_p3, %p1423_p2 }
  0x2c   :  { %1431 = shalt.err (!%p1428_p4)
}
  0x2d   :  { %s1432_s0 = scalar_lea.vmem %s44_s21, 1024  ;;  %p1437_p6 = scmp.lt.s32.totalorder %s44_s21, %s44_s21 }
  0x2e   :  { %p1433_p5 = scmp.ne.s32.totalorder %s44_s21, %s1432_s0  ;;  %p1438_p7 = scmp.lt.s32.totalorder %s1432_s0, %s1432_s0 }
  0x30   :  { %p1439_p8 = por %p1438_p7, %p1437_p6 }
  0x32   :  { %p1440_p9 = pnand %p1439_p8, %p1433_p5 }
  0x34   :  { %1443 = shalt.err (!%p1440_p9)
}
  0x35   :  { %49 = dma.hbm_to_vmem [thread:$0]  %s1638_s2, 1024, %s44_s21, [#allocation6], %s1497_s28, %s1497_s28, %s1498_s29  }
  0x36   :  { %s1444_s12 = scalar_lea.hbm %s1639_s3, 1024 }
  0x37   :  { %p1445_p10 = scmp.ne.s32.totalorder %s1639_s3, %s1444_s12  ;;  %p1448_p11 = scmp.lt.u32.totalorder %s1444_s12, %s1639_s3 }
  0x39   :  { %p1450_p12 = pnand %p1448_p11, %p1445_p10 }
  0x3b   :  { %1453 = shalt.err (!%p1450_p12)
}
  0x3c   :  { %s1454_s1 = scalar_lea.vmem %s1566_s23, 1024  ;;  %p1459_p0 = scmp.lt.s32.totalorder %s1566_s23, %s1566_s23 }
  0x3d   :  { %p1455_p13 = scmp.ne.s32.totalorder %s1566_s23, %s1454_s1  ;;  %p1460_p1 = scmp.lt.s32.totalorder %s1454_s1, %s1454_s1 }
  0x3f   :  { %p1461_p2 = por %p1460_p1, %p1459_p0 }
  0x41   :  { %p1462_p3 = pnand %p1461_p2, %p1455_p13 }
  0x43   :  { %1465 = shalt.err (!%p1462_p3)
}
  0x44   :  { %61 = dma.hbm_to_vmem [thread:$0]  %s1639_s3, 1024, %s1566_s23, [#allocation9], %s1497_s28, %s1497_s28, %s1498_s29  }
  0x45   :  { %1488 = dma.done.wait [#allocation3], 1024  }
  0x46   :  { %1489 = vsyncadd [#allocation3], 4294966272 }
  0x47   :  { %1490 = dma.done.wait [#allocation6], 9216  }
  0x48   :  { %1491 = vsyncadd [#allocation6], 4294958080 }
  0x49   :  { %1492 = dma.done.wait [#allocation9], 1024  }
  0x4a   :  { %1493 = vsyncadd [#allocation9], 4294966272  ;;  %v1298_v0 = vld [vmem:[#allocation5 + $0x40] sm:$0xff]   ;;  %v1302_v4 = vld [vmem:[#allocation5 + $0x48] sm:$0xff]   ;;  %vm1505_vm0 = vmmov 0  }
  0x4b   :  { %v1299_v1 = vld [vmem:[#allocation5 + $0xc0] sm:$0xff]   ;;  %1139 = vmatprep.subr.bf16.mxu0 %v1298_v0  ;;  %v1303_v5 = vld [vmem:[#allocation5 + $0xc8] sm:$0xff]   ;;  %v1306_v8 = vld [vmem:[#allocation5 + $0x50] sm:$0xff]  }
  0x4c   :  { %v1300_v2 = vld [vmem:[#allocation5] sm:$0xff]   ;;  %1161 = vmatprep.subr.bf16.mxu1 %v1299_v1  ;;  %v1304_v6 = vld [vmem:[#allocation5 + $0x8] sm:$0xff]   ;;  %v1307_v9 = vld [vmem:[#allocation5 + $0xd0] sm:$0xff]  }
  0x4d   :  { %v1301_v3 = vld [vmem:[#allocation5 + $0x80] sm:$0xff]   ;;  %1140 = vmatpush3.bf16.msra.mxu0 %v1300_v2  ;;  %v1305_v7 = vld [vmem:[#allocation5 + $0x88] sm:$0xff]   ;;  %v1308_v10 = vld [vmem:[#allocation5 + $0x10] sm:$0xff]  }
  0x4e   :  { %1162 = vmatpush3.bf16.msra.mxu1 %v1301_v3  ;;  %1141 = vmatprep.subr.bf16.mxu0 %v1302_v4  ;;  %v1309_v11 = vld [vmem:[#allocation5 + $0x90] sm:$0xff]   ;;  %v1310_v12 = vld [vmem:[#allocation5 + $0x58] sm:$0xff]   ;;  %v1314_v16 = vld [vmem:[#allocation5 + $0x60] sm:$0xff]  }
  0x4f   :  { %1163 = vmatprep.subr.bf16.mxu1 %v1303_v5  ;;  %v1311_v13 = vld [vmem:[#allocation5 + $0xd8] sm:$0xff]   ;;  %v1315_v17 = vld [vmem:[#allocation5 + $0xe0] sm:$0xff]   ;;  %v1318_v20 = vld [vmem:[#allocation5 + $0x68] sm:$0xff]  }
  0x50   :  { %v1312_v14 = vld [vmem:[#allocation5 + $0x18] sm:$0xff]   ;;  %v1316_v18 = vld [vmem:[#allocation5 + $0x20] sm:$0xff]   ;;  %v1319_v21 = vld [vmem:[#allocation5 + $0xe8] sm:$0xff]  }
  0x51   :  { %1142 = vmatpush3.bf16.msra.mxu0 %v1304_v6  ;;  %v1313_v15 = vld [vmem:[#allocation5 + $0x98] sm:$0xff]   ;;  %v1317_v19 = vld [vmem:[#allocation5 + $0xa0] sm:$0xff]   ;;  %v1320_v22 = vld [vmem:[#allocation5 + $0x28] sm:$0xff]  }
  0x52   :  { %1164 = vmatpush3.bf16.msra.mxu1 %v1305_v7  ;;  %1143 = vmatprep.subr.bf16.mxu0 %v1306_v8  ;;  %v1321_v23 = vld [vmem:[#allocation5 + $0xa8] sm:$0xff]   ;;  %v1322_v24 = vld [vmem:[#allocation5 + $0x70] sm:$0xff]   ;;  %v1326_v28 = vld [vmem:[#allocation5 + $0x78] sm:$0xff]  }
  0x53   :  { %1165 = vmatprep.subr.bf16.mxu1 %v1307_v9  ;;  %v1323_v25 = vld [vmem:[#allocation5 + $0xf0] sm:$0xff]   ;;  %v1327_v29 = vld [vmem:[#allocation5 + $0xf8] sm:$0xff]   ;;  %v78_v32 = vld [vmem:[#allocation2] sm:$0xff] }
  0x54   :  { %v1324_v26 = vld [vmem:[#allocation5 + $0x30] sm:$0xff]   ;;  %v1328_v30 = vld [vmem:[#allocation5 + $0x38] sm:$0xff]   ;;  %v82_v33 = vld [vmem:[#allocation2 + $0x20] sm:$0xff] }
  0x55   :  { %1144 = vmatpush3.bf16.msra.mxu0 %v1308_v10  ;;  %v1325_v27 = vld [vmem:[#allocation5 + $0xb0] sm:$0xff]   ;;  %v1329_v31 = vld [vmem:[#allocation5 + $0xb8] sm:$0xff]   ;;  %v79_v34 = vld [vmem:[#allocation2 + $0x8] sm:$0xff]  ;;  %v1051_v35 = vcombine.low %v78_v32, %v82_v33  ;;  %v1052_v36 = vcombine.high %v78_v32, %v82_v33 }
  0x56   :  { %1166 = vmatpush3.bf16.msra.mxu1 %v1309_v11  ;;  %1145 = vmatprep.subr.bf16.mxu0 %v1310_v12  ;;  %v83_v37 = vld [vmem:[#allocation2 + $0x28] sm:$0xff]  ;;  %v1330_v40 = vld [vmem:[#allocation5 + $0x140] sm:$0xff]   ;;  %v1338_v48 = vld [vmem:[#allocation5 + $0x150] sm:$0xff]  }
  0x57   :  { %1167 = vmatprep.subr.bf16.mxu1 %v1311_v13  ;;  %v1053_v38 = vcombine.low %v79_v34, %v83_v37  ;;  %v1054_v39 = vcombine.high %v79_v34, %v83_v37  ;;  %674 = vmatprep.mubr.bf16.mxu0 %v1052_v36  ;;  %v1331_v41 = vld [vmem:[#allocation5 + $0x1c0] sm:$0xff]   ;;  %v1334_v44 = vld [vmem:[#allocation5 + $0x148] sm:$0xff]   ;;  %v1339_v49 = vld [vmem:[#allocation5 + $0x1d0] sm:$0xff]  }
  0x58   :  { %v1332_v42 = vld [vmem:[#allocation5 + $0x100] sm:$0xff]   ;;  %v1335_v45 = vld [vmem:[#allocation5 + $0x1c8] sm:$0xff]   ;;  %v1340_v50 = vld [vmem:[#allocation5 + $0x110] sm:$0xff]  }
  0x59   :  { %1146 = vmatpush3.bf16.msra.mxu0 %v1312_v14  ;;  %715 = vmatprep.mubr.bf16.mxu1 %v1054_v39  ;;  %v1333_v43 = vld [vmem:[#allocation5 + $0x180] sm:$0xff]   ;;  %v1336_v46 = vld [vmem:[#allocation5 + $0x108] sm:$0xff]   ;;  %v1341_v51 = vld [vmem:[#allocation5 + $0x190] sm:$0xff]  }
  0x5a   :  { %1168 = vmatpush3.bf16.msra.mxu1 %v1313_v15  ;;  %1147 = vmatprep.subr.bf16.mxu0 %v1314_v16  ;;  %v1337_v47 = vld [vmem:[#allocation5 + $0x188] sm:$0xff]   ;;  %v1342_v52 = vld [vmem:[#allocation5 + $0x158] sm:$0xff]   ;;  %v1346_v56 = vld [vmem:[#allocation5 + $0x160] sm:$0xff]  }
  0x5b   :  { %1169 = vmatprep.subr.bf16.mxu1 %v1315_v17  ;;  %v1343_v53 = vld [vmem:[#allocation5 + $0x1d8] sm:$0xff]   ;;  %v1347_v57 = vld [vmem:[#allocation5 + $0x1e0] sm:$0xff]   ;;  %v1350_v60 = vld [vmem:[#allocation5 + $0x168] sm:$0xff]   ;;  %v1504_v17 = vmov 0.0  }
  0x5c   :  { %v1344_v54 = vld [vmem:[#allocation5 + $0x118] sm:$0xff]   ;;  %v1348_v58 = vld [vmem:[#allocation5 + $0x120] sm:$0xff]   ;;  %v1351_v61 = vld [vmem:[#allocation5 + $0x1e8] sm:$0xff]  }
  0x5d   :  { %1148 = vmatpush3.bf16.msra.mxu0 %v1316_v18  ;;  %v1345_v55 = vld [vmem:[#allocation5 + $0x198] sm:$0xff]   ;;  %v1349_v59 = vld [vmem:[#allocation5 + $0x1a0] sm:$0xff]   ;;  %v1352_v62 = vld [vmem:[#allocation5 + $0x128] sm:$0xff]  }
  0x5e   :  { %1170 = vmatpush3.bf16.msra.mxu1 %v1317_v19  ;;  %1149 = vmatprep.subr.bf16.mxu0 %v1318_v20  ;;  %v1353_v63 = vld [vmem:[#allocation5 + $0x1a8] sm:$0xff]   ;;  %v1354_v0 = vld [vmem:[#allocation5 + $0x170] sm:$0xff]   ;;  %v1358_v4 = vld [vmem:[#allocation5 + $0x178] sm:$0xff]  }
  0x5f   :  { %1171 = vmatprep.subr.bf16.mxu1 %v1319_v21  ;;  %v1355_v1 = vld [vmem:[#allocation5 + $0x1f0] sm:$0xff]   ;;  %v1359_v5 = vld [vmem:[#allocation5 + $0x1f8] sm:$0xff]   ;;  %v1362_v16 = vld [vmem:[#allocation7] sm:$0xff]  }
  0x60   :  { %v1356_v2 = vld [vmem:[#allocation5 + $0x130] sm:$0xff]   ;;  %v1360_v6 = vld [vmem:[#allocation5 + $0x138] sm:$0xff]   ;;  %v1363_v18 = vld [vmem:[#allocation7 + $0x8] sm:$0xff]  }
  0x61   :  { %1150 = vmatpush3.bf16.msra.mxu0 %v1320_v22  ;;  %v1357_v3 = vld [vmem:[#allocation5 + $0x1b0] sm:$0xff]   ;;  %v1361_v7 = vld [vmem:[#allocation5 + $0x1b8] sm:$0xff]   ;;  %v1366_v21 = vld [vmem:[#allocation7 + $0x20] sm:$0xff]  }
  0x62   :  { %1172 = vmatpush3.bf16.msra.mxu1 %v1321_v23  ;;  %1151 = vmatprep.subr.bf16.mxu0 %v1322_v24  ;;  %v80_v8 = vld [vmem:[#allocation2 + $0x10] sm:$0xff]  ;;  %v81_v12 = vld [vmem:[#allocation2 + $0x18] sm:$0xff]  ;;  %v1367_v22 = vld [vmem:[#allocation7 + $0x28] sm:$0xff]  }
  0x63   :  { %1173 = vmatprep.subr.bf16.mxu1 %v1323_v25  ;;  %v84_v9 = vld [vmem:[#allocation2 + $0x30] sm:$0xff]  ;;  %v85_v13 = vld [vmem:[#allocation2 + $0x38] sm:$0xff]  ;;  %v1370_v25 = vld [vmem:[#allocation8] sm:$0xff]  }
  0x64   :  { %v1055_v10 = vcombine.low %v80_v8, %v84_v9  ;;  %v1056_v11 = vcombine.high %v80_v8, %v84_v9  ;;  %v1057_v14 = vcombine.low %v81_v12, %v85_v13  ;;  %v1058_v15 = vcombine.high %v81_v12, %v85_v13  ;;  %v1364_v19 = vld [vmem:[#allocation7 + $0x10] sm:$0xff]   ;;  %v1365_v20 = vld [vmem:[#allocation7 + $0x18] sm:$0xff]   ;;  %v77_v34 = vld [vmem:[%s1640_s4] sm:$0xff]  ;;  %s1506_s4 = smov [#allocation10]  }
  0x65   :  { %1152 = vmatpush3.bf16.msra.mxu0 %v1324_v26  ;;  %v1368_v23 = vld [vmem:[#allocation7 + $0x30] sm:$0xff]   ;;  %v1369_v24 = vld [vmem:[#allocation7 + $0x38] sm:$0xff]   ;;  %v1371_v26 = vld [vmem:[#allocation8 + $0x8] sm:$0xff]   ;;  %s1037_s29 = sshll.u32 %s1506_s4, 4  ;;  %s1038_s29 = int_to_ptr.vmem [resolvable:$true] %s1037_s29 }
  0x66   :  { %1174 = vmatpush3.bf16.msra.mxu1 %v1325_v27  ;;  %1153 = vmatprep.subr.bf16.mxu0 %v1326_v28  ;;  %v1372_v27 = vld [vmem:[#allocation8 + $0x10] sm:$0xff]   ;;  %v1373_v28 = vld [vmem:[#allocation8 + $0x18] sm:$0xff]   ;;  %s1466_s18 = scalar_lea.vmem %s1038_s29, 256  ;;  %p1471_p5 = scmp.lt.s32.totalorder %s1038_s29, %s1038_s29 }
  0x67   :  { %1175 = vmatprep.subr.bf16.mxu1 %v1327_v29  ;;  %v1374_v29 = vld [vmem:[#allocation8 + $0x20] sm:$0xff]   ;;  %v1377_v8 = vld [vmem:[#allocation8 + $0x38] sm:$0xff]   ;;  %p1467_p4 = scmp.ne.s32.totalorder %s1038_s29, %s1466_s18  ;;  %p1472_p6 = scmp.lt.s32.totalorder %s1466_s18, %s1466_s18 }
  0x69   :  { %1154 = vmatpush3.bf16.msra.mxu0 %v1328_v30  ;;  %v1375_v30 = vld [vmem:[#allocation8 + $0x28] sm:$0xff]   ;;  %p1473_p7 = por %p1472_p6, %p1471_p5 }
  0x6a   :  { %1176 = vmatpush3.bf16.msra.mxu1 %v1329_v31  ;;  %1183 = vmatprep.subr.bf16.mxu0 %v1330_v40  ;;  %v214_v31 = vlaneseq }
  0x6b   :  { %1205 = vmatprep.subr.bf16.mxu1 %v1331_v41  ;;  %p1474_p8 = pnand %p1473_p7, %p1467_p4 }
  0x6c   :  { %675 = vmatmul.mubr.bf16.vlgmr.msra.gmra.mrb[0].mxu0 %v1051_v35  ;;  %v215_v32 = vshrl.u32 %v214_v31, 7 }
  0x6d   :  { %716 = vmatmul.mubr.bf16.vlgmr.msra.gmra.mrb[0].mxu1 %v1053_v38  ;;  %1184 = vmatpush3.bf16.msra.mxu0 %v1332_v42 }
  0x6e   :  { %1206 = vmatpush3.bf16.msra.mxu1 %v1333_v43  ;;  %1185 = vmatprep.subr.bf16.mxu0 %v1334_v44  ;;  %v216_v33 = vsub.s32 0, %v215_v32  ;;  %v827_v9 = vsub.s32 1, %v215_v32 }
  0x6f   :  { %1207 = vmatprep.subr.bf16.mxu1 %v1335_v45  ;;  %756 = vmatprep.mubr.bf16.mxu0 %v1056_v11 }
  0x70   :  { %797 = vmatprep.mubr.bf16.mxu1 %v1058_v15  ;;  %v217_v36 = vrot.slane %v77_v34, %v216_v33 }
  0x71   :  { %1186 = vmatpush3.bf16.msra.mxu0 %v1336_v46 }
  0x72   :  { %1208 = vmatpush3.bf16.msra.mxu1 %v1337_v47  ;;  %1187 = vmatprep.subr.bf16.mxu0 %v1338_v48 }
  0x73   :  { %1209 = vmatprep.subr.bf16.mxu1 %v1339_v49 }
  0x75   :  { %1188 = vmatpush3.bf16.msra.mxu0 %v1340_v50 }
  0x76   :  { %1210 = vmatpush3.bf16.msra.mxu1 %v1341_v51  ;;  %1189 = vmatprep.subr.bf16.mxu0 %v1342_v52 }
  0x77   :  { %1211 = vmatprep.subr.bf16.mxu1 %v1343_v53 }
  0x79   :  { %1190 = vmatpush3.bf16.msra.mxu0 %v1344_v54 }
  0x7a   :  { %1212 = vmatpush3.bf16.msra.mxu1 %v1345_v55  ;;  %1191 = vmatprep.subr.bf16.mxu0 %v1346_v56 }
  0x7b   :  { %1213 = vmatprep.subr.bf16.mxu1 %v1347_v57 }
  0x7d   :  { %1192 = vmatpush3.bf16.msra.mxu0 %v1348_v58 }
  0x7e   :  { %1214 = vmatpush3.bf16.msra.mxu1 %v1349_v59  ;;  %1193 = vmatprep.subr.bf16.mxu0 %v1350_v60 }
  0x7f   :  { %1215 = vmatprep.subr.bf16.mxu1 %v1351_v61 }
  0x81   :  { %1194 = vmatpush3.bf16.msra.mxu0 %v1352_v62 }
  0x82   :  { %1216 = vmatpush3.bf16.msra.mxu1 %v1353_v63  ;;  %1195 = vmatprep.subr.bf16.mxu0 %v1354_v0 }
  0x83   :  { %1217 = vmatprep.subr.bf16.mxu1 %v1355_v1 }
  0x85   :  { %1196 = vmatpush3.bf16.msra.mxu0 %v1356_v2 }
  0x86   :  { %1218 = vmatpush3.bf16.msra.mxu1 %v1357_v3  ;;  %1197 = vmatprep.subr.bf16.mxu0 %v1358_v4 }
  0x87   :  { %1219 = vmatprep.subr.bf16.mxu1 %v1359_v5 }
  0x89   :  { %1198 = vmatpush3.bf16.msra.mxu0 %v1360_v6 }
  0x8a   :  { %1220 = vmatpush3.bf16.msra.mxu1 %v1361_v7  ;;  %1245 = vmatprep.subr.bf16.mxu0 %v1504_v17  ;;  %v1376_v7 = vld [vmem:[#allocation8 + $0x30] sm:$0xff]  }
  0x8b   :  { %1265 = vmatprep.subr.bf16.mxu1 %v1504_v17 }
  0x8c   :  { %757 = vmatmul.mubr.bf16.vlgmr.msra.gmra.mrb[4].mxu0 %v1055_v10  ;;  %v828_v10 = vrot.slane %v77_v34, %v827_v9 }
  0x8d   :  { %798 = vmatmul.mubr.bf16.vlgmr.msra.gmra.mrb[4].mxu1 %v1057_v14  ;;  %1246 = vmatpush3.bf16.msra.mxu0 %v1362_v16 }
  0x8e   :  { %1247 = vmatprep.subr.bf16.mxu0 %v1504_v17  ;;  %1261 = vmatprep.mubr.msk.bf16.mxu0 %vm1505_vm0, %v1504_v17 }
  0x8f   :  { %1281 = vmatprep.mubr.msk.bf16.mxu1 %vm1505_vm0, %v1504_v17  ;;  %1266 = vmatpush3.bf16.msra.mxu1 %v1370_v25 }
  0x90   :  { %1267 = vmatprep.subr.bf16.mxu1 %v1504_v17 }
  0x91   :  { %1248 = vmatpush3.bf16.msra.mxu0 %v1363_v18 }
  0x92   :  { %1249 = vmatprep.subr.bf16.mxu0 %v1504_v17 }
  0x93   :  { %1268 = vmatpush3.bf16.msra.mxu1 %v1371_v26 }
  0x94   :  { %1269 = vmatprep.subr.bf16.mxu1 %v1504_v17 }
  0x95   :  { %1250 = vmatpush3.bf16.msra.mxu0 %v1364_v19 }
  0x96   :  { %1251 = vmatprep.subr.bf16.mxu0 %v1504_v17 }
  0x97   :  { %1270 = vmatpush3.bf16.msra.mxu1 %v1372_v27 }
  0x98   :  { %1271 = vmatprep.subr.bf16.mxu1 %v1504_v17 }
  0x99   :  { %1252 = vmatpush3.bf16.msra.mxu0 %v1365_v20 }
  0x9a   :  { %1253 = vmatprep.subr.bf16.mxu0 %v1504_v17 }
  0x9b   :  { %1272 = vmatpush3.bf16.msra.mxu1 %v1373_v28 }
  0x9c   :  { %1273 = vmatprep.subr.bf16.mxu1 %v1504_v17 }
  0x9d   :  { %1254 = vmatpush3.bf16.msra.mxu0 %v1366_v21  ;;  %v939_v21 = vsub.s32 2, %v215_v32 }
  0x9e   :  { %1255 = vmatprep.subr.bf16.mxu0 %v1504_v17 }
  0x9f   :  { %1274 = vmatpush3.bf16.msra.mxu1 %v1374_v29 }
  0xa0   :  { %1275 = vmatprep.subr.bf16.mxu1 %v1504_v17 }
  0xa1   :  { %1256 = vmatpush3.bf16.msra.mxu0 %v1367_v22  ;;  %v940_v22 = vrot.slane %v77_v34, %v939_v21 }
  0xa2   :  { %1257 = vmatprep.subr.bf16.mxu0 %v1504_v17 }
  0xa3   :  { %1276 = vmatpush3.bf16.msra.mxu1 %v1375_v30 }
  0xa4   :  { %1277 = vmatprep.subr.bf16.mxu1 %v1504_v17 }
  0xa5   :  { %1258 = vmatpush3.bf16.msra.mxu0 %v1368_v23 }
  0xa6   :  { %1259 = vmatprep.subr.bf16.mxu0 %v1504_v17 }
  0xa7   :  { %1278 = vmatpush3.bf16.msra.mxu1 %v1376_v7 }
  0xa8   :  { %1279 = vmatprep.subr.bf16.mxu1 %v1504_v17 }
  0xa9   :  { %1260 = vmatpush3.bf16.msra.mxu0 %v1369_v24 }
  0xab   :  { %1280 = vmatpush3.bf16.msra.mxu1 %v1377_v8 }
 0x13f   :  { %v1155_v35 = vpop.f32.mrb[0].mxu0 }
 0x140   :  { %v1177_v37 = vpop.f32.mrb[0].mxu1  ;;  %v1156_v38 = vpop.f32.mrb[1].mxu0 }
 0x141   :  { %v1157_v39 = vadd.f32 %v1156_v38, %v1155_v35  ;;  %v1178_v40 = vpop.f32.mrb[1].mxu1  ;;  %v1158_v41 = vpop.f32.mrb[2].mxu0 }
 0x142   :  { %v1179_v42 = vadd.f32 %v1178_v40, %v1177_v37  ;;  %v1180_v43 = vpop.f32.mrb[2].mxu1  ;;  %v1159_v44 = vpop.f32.mrb[3].mxu0 }
 0x143   :  { %v677_v45 = vadd.f32 %v1157_v39, %v217_v36  ;;  %v1160_v46 = vadd.f32 %v1159_v44, %v1158_v41  ;;  %v1181_v47 = vpop.f32.mrb[3].mxu1 }
 0x144   :  { %v1182_v48 = vadd.f32 %v1181_v47, %v1180_v43 }
 0x145   :  { %v718_v49 = vadd.f32 %v1179_v42, %v677_v45  ;;  %v680_v50 = vadd.f32 %v1160_v46, %v217_v36 }
 0x147   :  { %v721_v51 = vadd.f32 %v1182_v48, %v680_v50 }
 0x15f   :  { %v1199_v52 = vpop.f32.mrb[4].mxu0 }
 0x160   :  { %v1221_v53 = vpop.f32.mrb[4].mxu1  ;;  %v1200_v54 = vpop.f32.mrb[5].mxu0 }
 0x161   :  { %v1201_v55 = vadd.f32 %v1200_v54, %v1199_v52  ;;  %v1222_v56 = vpop.f32.mrb[5].mxu1  ;;  %v1202_v57 = vpop.f32.mrb[6].mxu0 }
 0x162   :  { %v1223_v58 = vadd.f32 %v1222_v56, %v1221_v53  ;;  %v1224_v59 = vpop.f32.mrb[6].mxu1  ;;  %v1203_v60 = vpop.f32.mrb[7].mxu0 }
 0x163   :  { %v759_v61 = vadd.f32 %v1201_v55, %v718_v49  ;;  %v1204_v62 = vadd.f32 %v1203_v60, %v1202_v57  ;;  %v1225_v63 = vpop.f32.mrb[7].mxu1 }
 0x164   :  { %v1226_v0 = vadd.f32 %v1225_v63, %v1224_v59 }
 0x165   :  { %v800_v1 = vadd.f32 %v1223_v58, %v759_v61  ;;  %v762_v2 = vadd.f32 %v1204_v62, %v721_v51 }
 0x167   :  { %v803_v3 = vadd.f32 %v1226_v0, %v762_v2  ;;  %v806_v4 = vmax.f32 %v800_v1, 0.0 }
 0x169   :  { %v807_v5 = vmax.f32 %v803_v3, 0.0 }
 0x16b   :  { %v808_v6 = vpack.c.bf16 %v807_v5, %v806_v4 }
 0x16d   :  { %1262 = vmatmul.mubr.bf16.vlgmr.msra.gmra.mrb[8].mxu0 %v808_v6 }
 0x240   :  { %v911_v11 = vpop.f32.mrb[8].mxu0 }
 0x241   :  { %v912_v12 = vadd.f32 %v911_v11, %v828_v10  ;;  %v1263_v13 = vpop.f32.mrb[9].mxu0 }
 0x242   :  { %v914_v14 = vpop.f32.mrb[10].mxu0 }
 0x243   :  { %v915_v15 = vadd.f32 %v914_v14, %v828_v10  ;;  %v1264_v16 = vpop.f32.mrb[11].mxu0  ;;  %v918_v18 = vmax.f32 %v912_v12, 0.0 }
 0x245   :  { %v919_v19 = vmax.f32 %v915_v15, 0.0 }
 0x247   :  { %v920_v20 = vpack.c.bf16 %v919_v19, %v918_v18 }
 0x249   :  { %1282 = vmatmul.mubr.bf16.vlgmr.msra.gmra.mrb[8].mxu1 %v920_v20 }
 0x31c   :  { %v1023_v23 = vpop.f32.mrb[8].mxu1 }
 0x31d   :  { %v1024_v17 = vadd.f32 %v1023_v23, %v940_v22  ;;  %v1283_v24 = vpop.f32.mrb[9].mxu1 }
 0x31e   :  { %v1026_v25 = vpop.f32.mrb[10].mxu1 }
 0x31f   :  { %1030 = vst [vmem:[#allocation10] sm:$0xff] %v1024_v17  ;;  %v1027_v26 = vadd.f32 %v1026_v25, %v940_v22  ;;  %v1284_v27 = vpop.f32.mrb[11].mxu1 }
 0x321   :  { %1031 = vst [vmem:[#allocation10 + $0x8] sm:$0xff] %v1027_v26 }
 0x322   :  { %1477 = shalt.err (!%p1474_p8)
}
 0x323   :  { %s1478_s21 = scalar_lea.hbm %s1641_s5, 256 }
 0x324   :  { %p1479_p9 = scmp.ne.s32.totalorder %s1641_s5, %s1478_s21  ;;  %p1482_p10 = scmp.lt.u32.totalorder %s1478_s21, %s1641_s5 }
 0x326   :  { %p1484_p11 = pnand %p1482_p10, %p1479_p9 }
 0x328   :  { %1487 = shalt.err (!%p1484_p11)
}
 0x329   :  { %s1507_s26 = smov 128   ;;  %s1508_s27 = smov 8  }
 0x32a   :  { %1043 = dma.vmem_to_hbm [thread:$0]  %s1038_s29, 256, %s1641_s5, [#allocation4], %s1507_s26, %s1507_s26, %s1508_s27  }
 0x32b   :  { %1494 = dma.done.wait [#allocation4], 256  }
 0x32c   :  { %1495 = vsyncadd [#allocation4], 4294967040 }
 0x32d   :  { %1047 = vsyncpa [#allocation3], 1 }
 0x32e   :  { %1048 = vsyncpa [#allocation6], 1 }
 0x32f   :  { %1049 = vsyncpa [#allocation9], 1 }
 0x330   :  { %1050 = vsyncpa [#allocation4], 1 }

</bundles_post_ra>
